<compile_context>
chip_gen: v6e
topology: v6e:2x2x1
jax: 0.10.0
libtpu: 0.0.40
codegen_flags: <defaults>
</compile_context>

<pallas_src>
import functools

import jax
import jax.numpy as jnp
from jax.experimental import pallas as pl
from jax.experimental.pallas import tpu as pltpu

_LANE = 128


def _round_up(x, m):
    return (x + m - 1) // m * m


def _mixer_kernel(q_ref, s_ref, wf_ref, bf_ref, b2row_ref, b2bias_ref, out_ref,
                  *, n_agents, hidden, state_space, offs):
    s = s_ref[...]                        # (TB, S)
    qa = q_ref[...]                       # (TB, A)
    A, H, S = n_agents, hidden, state_space
    o_w1, o_b1, o_w2, o_hb = offs

    # Single fused MXU pass for W1 / B1 / W2 / B2[0]; one fused bias add.
    fused = jnp.dot(s, wf_ref[...], preferred_element_type=jnp.float32) + bf_ref[...]

    # Segment starts are 128-lane aligned (see pack_params).
    w1 = jnp.abs(fused[:, o_w1:o_w1 + A * H])           # (TB, A*H)
    b1 = fused[:, o_b1:o_b1 + H]                        # (TB, H)
    w2 = jnp.abs(fused[:, o_w2:o_w2 + H])               # (TB, H)
    hb = jnp.maximum(fused[:, o_hb:o_hb + S], 0.0)      # (TB, S)  (ReLU)

    # bmm(Qagents[:,1,A], w1[:,A,H]) + b1  -> static unroll over agents (A small)
    acc = b1
    for a in range(A):
        acc = acc + qa[:, a:a + 1] * w1[:, a * H:(a + 1) * H]

    # ELU(alpha=1); clamp exp argument so the untaken branch stays finite.
    h1 = jnp.where(acc > 0, acc, jnp.exp(jnp.minimum(acc, 0.0)) - 1.0)  # (TB, H)

    # Row-wise dot products on the VPU/XLU (no N=1 MXU matmuls):
    #   bmm(h1[:,1,H], w2[:,H,1])   and   hb @ B2[2].weight
    q = jnp.sum(h1 * w2, axis=-1) + jnp.sum(hb * b2row_ref[...], axis=-1)  # (TB,)

    # Lane-dense output row: (1, 1, TB)
    out_ref[...] = (q[None, :] + b2bias_ref[...])[None]


def pack_params(params, n_agents):
    """Pack the four state-driven linears into one lane-padded fused weight."""
    S, AH = params["w1_w"].shape
    H = params["b1_w"].shape[1]
    assert AH == n_agents * H
    widths = (AH, H, H, S)                      # W1, B1, W2, B2[0] output widths
    padded = [_round_up(w, _LANE) for w in widths]
    offs, o = [], 0
    for p in padded:
        offs.append(o)
        o += p
    n_total = o

    wf = jnp.zeros((S, n_total), jnp.float32)
    bf = jnp.zeros((1, n_total), jnp.float32)
    for off, width, wk, bk in zip(offs, widths,
                                  ("w1_w", "b1_w", "w2_w", "b2a_w"),
                                  ("w1_b", "b1_b", "w2_b", "b2a_b")):
        wf = wf.at[:, off:off + width].set(params[wk])
        bf = bf.at[:, off:off + width].set(params[bk])

    return {
        "wf": wf,                              # (S, n_total)
        "bf": bf,                              # (1, n_total)
        "b2_row": params["b2b_w"].T,           # (1, S)   B2[2] weight as a lane row
        "b2_bias": params["b2b_b"],            # (1, 1)   B2[2] bias
        "offs": tuple(int(x) for x in offs),
        "n_agents": int(n_agents),
        "hidden": int(H),
        "state_space": int(S),
        "n_total": int(n_total),
    }


def mixer_forward(qagents, state, packed, *, tb=512):
    """Pallas implementation of Mixer.forward. Returns a (B,) array."""
    B, A = qagents.shape
    S = state.shape[1]
    assert A == packed["n_agents"] and S == packed["state_space"]
    N = packed["n_total"]
    H = packed["hidden"]

    # Choose the batch tile: big (amortize pipeline overhead, fill MXU rows),
    # pad the batch to a multiple of it, but keep >= 2 grid steps so the
    # "parallel" axis can still span both v7x TensorCores.
    tb = max(8, min(_round_up(tb, 8), _round_up(B, 8)))
    bp = _round_up(B, tb)
    if bp // tb < 2 and bp >= 16:
        tb = _round_up(bp // 2, 8)
        bp = _round_up(B, tb)
    if bp != B:
        pad = bp - B
        qagents = jnp.pad(qagents, ((0, pad), (0, 0)))
        state = jnp.pad(state, ((0, pad), (0, 0)))
    grid = bp // tb

    kernel = functools.partial(
        _mixer_kernel,
        n_agents=A, hidden=H, state_space=S, offs=packed["offs"])

    batched = lambda i: (i, 0)     # batch-tiled tensors
    full = lambda i: (0, 0)        # weights: single full block, fetched once

    out = pl.pallas_call(
        kernel,
        out_shape=jax.ShapeDtypeStruct((grid, 1, tb), jnp.float32),
        grid_spec=pltpu.PrefetchScalarGridSpec(
            num_scalar_prefetch=0,
            grid=(grid,),
            in_specs=[
                pl.BlockSpec((tb, A), batched),      # Qagents
                pl.BlockSpec((tb, S), batched),      # state
                pl.BlockSpec((S, N), full),          # fused hypernet weights
                pl.BlockSpec((1, N), full),          # fused hypernet biases
                pl.BlockSpec((1, S), full),          # B2[2] weight row
                pl.BlockSpec((1, 1), full),          # B2[2] bias
            ],
            out_specs=pl.BlockSpec((1, 1, tb), lambda i: (i, 0, 0)),
        ),
        compiler_params=pltpu.CompilerParams(
            dimension_semantics=("parallel",)),
    )(qagents, state, packed["wf"], packed["bf"],
      packed["b2_row"], packed["b2_bias"])

    return out.reshape(-1)[:B]


def mixer_reference(qagents, state, params):
    """Pure-JAX reference mirroring the PyTorch module."""
    B = state.shape[0]
    A = qagents.shape[1]
    H = params["b1_w"].shape[1]
    w1 = jnp.abs(state @ params["w1_w"] + params["w1_b"]).reshape(B, A, H)
    b1 = (state @ params["b1_w"] + params["b1_b"]).reshape(B, 1, H)
    qtot = jnp.einsum("ba,bah->bh", qagents, w1)[:, None, :] + b1
    qtot = jnp.where(qtot > 0, qtot, jnp.exp(qtot) - 1.0)          # ELU
    w2 = jnp.abs(state @ params["w2_w"] + params["w2_b"]).reshape(B, H, 1)
    hb = jnp.maximum(state @ params["b2a_w"] + params["b2a_b"], 0.0)
    b2 = (hb @ params["b2b_w"] + params["b2b_b"]).reshape(B, 1, 1)
    out = jnp.einsum("bqh,bho->bqo", qtot, w2) + b2
    return out.reshape(-1)


def init_params(key, state_space, n_agents, hidden):
    """Deterministic synthetic parameters (PyTorch-style init, pre-transposed)."""
    ks = jax.random.split(key, 10)

    def lin(kw, kb, fan_in, fan_out):
        bound = 1.0 / jnp.sqrt(fan_in)
        w = jax.random.uniform(kw, (fan_in, fan_out), jnp.float32, -bound, bound)
        b = jax.random.uniform(kb, (1, fan_out), jnp.float32, -bound, bound)
        return w, b

    p = {}
    p["w1_w"], p["w1_b"] = lin(ks[0], ks[1], state_space, n_agents * hidden)
    p["b1_w"], p["b1_b"] = lin(ks[2], ks[3], state_space, hidden)
    p["w2_w"], p["w2_b"] = lin(ks[4], ks[5], state_space, hidden)
    p["b2a_w"], p["b2a_b"] = lin(ks[6], ks[7], state_space, state_space)
    p["b2b_w"], p["b2b_b"] = lin(ks[8], ks[9], state_space, 1)
    return p


if __name__ == "__main__":
    B, S, A, H = 60, 16, 4, 32   # non-multiple batch also exercises the padding path

    key = jax.random.PRNGKey(0)
    k_q, k_s, k_p = jax.random.split(key, 3)
    qagents = jax.random.normal(k_q, (B, A), jnp.float32)
    state = jax.random.normal(k_s, (B, S), jnp.float32)
    params = init_params(k_p, S, A, H)
    packed = pack_params(params, n_agents=A)

    ref = mixer_reference(qagents, state, params)

    out = jax.block_until_ready(mixer_forward(qagents, state, packed))          # auto tile
    out_multi = jax.block_until_ready(mixer_forward(qagents, state, packed, tb=16))  # multi-step grid

    assert out.shape == (B,)
    assert jnp.allclose(out, ref, atol=1e-4, rtol=1e-4), (out, ref)
    assert jnp.allclose(out_multi, ref, atol=1e-4, rtol=1e-4), (out_multi, ref)

    print("KERNEL_OK")
</pallas_src>

<mosaic_0001>
module attributes {stable_mosaic.version = 11 : i64} {
  func.func @_mixer_kernel(%arg0: i32, %arg1: memref<32x4xf32, #tpu.memory_space<vmem>>, %arg2: memref<32x16xf32, #tpu.memory_space<vmem>>, %arg3: memref<16x512xf32, #tpu.memory_space<vmem>>, %arg4: memref<1x512xf32, #tpu.memory_space<vmem>>, %arg5: memref<1x16xf32, #tpu.memory_space<vmem>>, %arg6: memref<1x1xf32, #tpu.memory_space<vmem>>, %arg7: memref<1x1x32xf32, #tpu.memory_space<vmem>>) attributes {dimension_semantics = [#tpu.dimension_semantics<parallel>], iteration_bounds = array<i64: 2>, scalar_prefetch = 0 : i64, scratch_operands = 0 : i64, tpu.core_type = #tpu.core_type<tc>, window_params = [{transform_indices = @transform_0, window_bounds = array<i64: 32, 4>}, {transform_indices = @transform_1, window_bounds = array<i64: 32, 16>}, {pipeline_mode = #tpu.pipeline_mode<synchronous>, transform_indices = @transform_2, window_bounds = array<i64: 16, 512>}, {pipeline_mode = #tpu.pipeline_mode<synchronous>, transform_indices = @transform_3, window_bounds = array<i64: 1, 512>}, {pipeline_mode = #tpu.pipeline_mode<synchronous>, transform_indices = @transform_4, window_bounds = array<i64: 1, 16>}, {pipeline_mode = #tpu.pipeline_mode<synchronous>, transform_indices = @transform_5, window_bounds = array<i64: 1, 1>}, {transform_indices = @transform_6, window_bounds = array<i64: 1, 1, 32>}]} {
    %c0 = arith.constant 0 : index
    %c0_0 = arith.constant 0 : index
    %0 = vector.load %arg2[%c0, %c0_0] : memref<32x16xf32, #tpu.memory_space<vmem>>, vector<32x16xf32>
    %c0_1 = arith.constant 0 : index
    %c0_2 = arith.constant 0 : index
    %1 = vector.load %arg1[%c0_1, %c0_2] : memref<32x4xf32, #tpu.memory_space<vmem>>, vector<32x4xf32>
    %c0_3 = arith.constant 0 : index
    %c0_4 = arith.constant 0 : index
    %2 = vector.load %arg3[%c0_3, %c0_4] : memref<16x512xf32, #tpu.memory_space<vmem>>, vector<16x512xf32>
    %cst = arith.constant dense<0.000000e+00> : vector<32x512xf32>
    %3 = tpu.matmul %0, %2, %cst {dimension_numbers = #tpu.dot_dimension_numbers<[1], [0], [0], [1], [0, 0, 1, 1], [], []>} : vector<32x16xf32>, vector<16x512xf32>, vector<32x512xf32> -> vector<32x512xf32>
    %c0_5 = arith.constant 0 : index
    %c0_6 = arith.constant 0 : index
    %4 = vector.load %arg4[%c0_5, %c0_6] : memref<1x512xf32, #tpu.memory_space<vmem>>, vector<1x512xf32>
    %5 = vector.broadcast %4 : vector<1x512xf32> to vector<32x512xf32>
    %6 = arith.addf %3, %5 : vector<32x512xf32>
    %7 = vector.extract_strided_slice %6 {offsets = [0, 0], sizes = [32, 128], strides = [1, 1]} : vector<32x512xf32> to vector<32x128xf32>
    %8 = math.absf %7 : vector<32x128xf32>
    %9 = vector.extract_strided_slice %6 {offsets = [0, 128], sizes = [32, 32], strides = [1, 1]} : vector<32x512xf32> to vector<32x32xf32>
    %10 = vector.extract_strided_slice %6 {offsets = [0, 256], sizes = [32, 32], strides = [1, 1]} : vector<32x512xf32> to vector<32x32xf32>
    %11 = math.absf %10 : vector<32x32xf32>
    %12 = vector.extract_strided_slice %6 {offsets = [0, 384], sizes = [32, 16], strides = [1, 1]} : vector<32x512xf32> to vector<32x16xf32>
    %cst_7 = arith.constant 0.000000e+00 : f32
    %13 = vector.broadcast %cst_7 : f32 to vector<32x16xf32>
    %14 = arith.maximumf %12, %13 : vector<32x16xf32>
    %15 = vector.extract_strided_slice %1 {offsets = [0, 0], sizes = [32, 1], strides = [1, 1]} : vector<32x4xf32> to vector<32x1xf32>
    %16 = vector.extract_strided_slice %8 {offsets = [0, 0], sizes = [32, 32], strides = [1, 1]} : vector<32x128xf32> to vector<32x32xf32>
    %17 = vector.broadcast %15 : vector<32x1xf32> to vector<32x32xf32>
    %18 = arith.mulf %17, %16 : vector<32x32xf32>
    %19 = arith.addf %9, %18 : vector<32x32xf32>
    %20 = vector.extract_strided_slice %1 {offsets = [0, 1], sizes = [32, 1], strides = [1, 1]} : vector<32x4xf32> to vector<32x1xf32>
    %21 = vector.extract_strided_slice %8 {offsets = [0, 32], sizes = [32, 32], strides = [1, 1]} : vector<32x128xf32> to vector<32x32xf32>
    %22 = vector.broadcast %20 : vector<32x1xf32> to vector<32x32xf32>
    %23 = arith.mulf %22, %21 : vector<32x32xf32>
    %24 = arith.addf %19, %23 : vector<32x32xf32>
    %25 = vector.extract_strided_slice %1 {offsets = [0, 2], sizes = [32, 1], strides = [1, 1]} : vector<32x4xf32> to vector<32x1xf32>
    %26 = vector.extract_strided_slice %8 {offsets = [0, 64], sizes = [32, 32], strides = [1, 1]} : vector<32x128xf32> to vector<32x32xf32>
    %27 = vector.broadcast %25 : vector<32x1xf32> to vector<32x32xf32>
    %28 = arith.mulf %27, %26 : vector<32x32xf32>
    %29 = arith.addf %24, %28 : vector<32x32xf32>
    %30 = vector.extract_strided_slice %1 {offsets = [0, 3], sizes = [32, 1], strides = [1, 1]} : vector<32x4xf32> to vector<32x1xf32>
    %31 = vector.extract_strided_slice %8 {offsets = [0, 96], sizes = [32, 32], strides = [1, 1]} : vector<32x128xf32> to vector<32x32xf32>
    %32 = vector.broadcast %30 : vector<32x1xf32> to vector<32x32xf32>
    %33 = arith.mulf %32, %31 : vector<32x32xf32>
    %34 = arith.addf %29, %33 : vector<32x32xf32>
    %cst_8 = arith.constant 0.000000e+00 : f32
    %35 = vector.broadcast %cst_8 : f32 to vector<32x32xf32>
    %36 = arith.cmpf ogt, %34, %35 : vector<32x32xf32>
    %cst_9 = arith.constant 0.000000e+00 : f32
    %37 = vector.broadcast %cst_9 : f32 to vector<32x32xf32>
    %38 = arith.minimumf %34, %37 : vector<32x32xf32>
    %39 = math.exp %38 : vector<32x32xf32>
    %cst_10 = arith.constant 1.000000e+00 : f32
    %40 = vector.broadcast %cst_10 : f32 to vector<32x32xf32>
    %41 = arith.subf %39, %40 : vector<32x32xf32>
    %42 = arith.select %36, %34, %41 : vector<32x32xi1>, vector<32x32xf32>
    %43 = arith.mulf %42, %11 : vector<32x32xf32>
    %cst_11 = arith.constant dense<0.000000e+00> : vector<32xf32>
    %44 = vector.multi_reduction <add>, %43, %cst_11 [1] : vector<32x32xf32> to vector<32xf32>
    %c0_12 = arith.constant 0 : index
    %c0_13 = arith.constant 0 : index
    %45 = vector.load %arg5[%c0_12, %c0_13] : memref<1x16xf32, #tpu.memory_space<vmem>>, vector<1x16xf32>
    %46 = vector.broadcast %45 : vector<1x16xf32> to vector<32x16xf32>
    %47 = arith.mulf %14, %46 : vector<32x16xf32>
    %cst_14 = arith.constant dense<0.000000e+00> : vector<32xf32>
    %48 = vector.multi_reduction <add>, %47, %cst_14 [1] : vector<32x16xf32> to vector<32xf32>
    %49 = arith.addf %44, %48 : vector<32xf32>
    %50 = vector.shape_cast %49 : vector<32xf32> to vector<1x32xf32>
    %c0_15 = arith.constant 0 : index
    %c0_16 = arith.constant 0 : index
    %51 = vector.load %arg6[%c0_15, %c0_16] : memref<1x1xf32, #tpu.memory_space<vmem>>, vector<1x1xf32>
    %52 = vector.broadcast %51 : vector<1x1xf32> to vector<1x32xf32>
    %53 = arith.addf %50, %52 : vector<1x32xf32>
    %54 = vector.shape_cast %53 : vector<1x32xf32> to vector<1x1x32xf32>
    %c0_17 = arith.constant 0 : index
    %c0_18 = arith.constant 0 : index
    %c0_19 = arith.constant 0 : index
    %55 = vector.load %arg7[%c0_17, %c0_18, %c0_19] : memref<1x1x32xf32, #tpu.memory_space<vmem>>, vector<1x1x32xf32>
    tpu.vector_store %arg7[%c0_17, %c0_18, %c0_19], %54 {strides = array<i32>} : memref<1x1x32xf32, #tpu.memory_space<vmem>>, vector<1x1x32xf32>,
    return
  }
  func.func @transform_0(%arg0: i32) -> (i32, i32) {
    %c0_i32 = arith.constant 0 : i32
    %c0_i32_0 = arith.constant 0 : i32
    return %arg0, %c0_i32 : i32, i32
  }
  func.func @transform_1(%arg0: i32) -> (i32, i32) {
    %c0_i32 = arith.constant 0 : i32
    %c0_i32_0 = arith.constant 0 : i32
    return %arg0, %c0_i32 : i32, i32
  }
  func.func @transform_2(%arg0: i32) -> (i32, i32) {
    %c0_i32 = arith.constant 0 : i32
    %c0_i32_0 = arith.constant 0 : i32
    %c0_i32_1 = arith.constant 0 : i32
    return %c0_i32, %c0_i32_0 : i32, i32
  }
  func.func @transform_3(%arg0: i32) -> (i32, i32) {
    %c0_i32 = arith.constant 0 : i32
    %c0_i32_0 = arith.constant 0 : i32
    %c0_i32_1 = arith.constant 0 : i32
    return %c0_i32, %c0_i32_0 : i32, i32
  }
  func.func @transform_4(%arg0: i32) -> (i32, i32) {
    %c0_i32 = arith.constant 0 : i32
    %c0_i32_0 = arith.constant 0 : i32
    %c0_i32_1 = arith.constant 0 : i32
    return %c0_i32, %c0_i32_0 : i32, i32
  }
  func.func @transform_5(%arg0: i32) -> (i32, i32) {
    %c0_i32 = arith.constant 0 : i32
    %c0_i32_0 = arith.constant 0 : i32
    %c0_i32_1 = arith.constant 0 : i32
    return %c0_i32, %c0_i32_0 : i32, i32
  }
  func.func @transform_6(%arg0: i32) -> (i32, i32, i32) {
    %c0_i32 = arith.constant 0 : i32
    %c0_i32_0 = arith.constant 0 : i32
    %c0_i32_1 = arith.constant 0 : i32
    return %arg0, %c0_i32, %c0_i32_0 : i32, i32, i32
  }
}

</mosaic_0001>

<bundles_post_ra>
// kernel: tpu_custom_call.1
= control target key start
LH: loop header
LB: loop body
LE: loop exit
PB: predicated region body
PF: predicated region fallthrough
CT: control target
= control target key end

     0   :  { %s1257_s0 = inlined_call_operand.vmem [shape: f32[64,4], index: 0, kind: input, shape index: {}]   ;;  %s1258_s1 = inlined_call_operand.vmem [shape: f32[64,16], index: 1, kind: input, shape index: {}]   ;;  %s1259_s2 = inlined_call_operand.vmem [shape: f32[16,512], index: 2, kind: input, shape index: {}]   ;;  %s1260_s3 = inlined_call_operand.vmem [shape: f32[1,512], index: 3, kind: input, shape index: {}]   ;;  %s1261_s4 = inlined_call_operand.vmem [shape: f32[1,16], index: 4, kind: input, shape index: {}]   ;;  %s1262_s5 = inlined_call_operand.<no memory space> [shape: f32[1,1], index: 5, kind: input, shape index: {}]   ;;  %s1263_s6 = inlined_call_operand.hbm [shape: f32[2,1,32], index: 6, kind: output, shape index: {}]  }
   0x1   :  { %v11_v0 = vstv %s1262_s5 }
   0x2   :  { %12 = vst [vmem:[#allocation2] sm:$0x1] %v11_v0 }
   0x3   :  { %13 = vsyncpa [#allocation4], 0 }
   0x4   :  { %15 = vsyncpa [#allocation4 + $0x1], 0  ;;  %s1056_s23 = smov 0   ;;  %s1058_s24 = smov 0  }
   0x5   :  { %s1060_s25 = smov 0   ;;  %s1062_s26 = smov 0  }
   0x6 LB: > { %s1077_s5 = sadd.s32 4294967295, %s1007_s26   ;;  %s860_s27 = sadd.s32 4294967294, %s1007_s26   ;;  %s1007_s26 = sphi %s1062_s26, %s1269_s26   ;;  %s1003_s25 = sphi %s1060_s25, %s1268_s25   ;;  %s999_s24 = sphi %s1058_s24, %s1267_s24   ;;  %s995_s23 = sphi %s1056_s23, %s1266_s23  }
   0x7   : > { %s1081_s28 = sadd.s32 1, %s1007_s26   ;;  %s164_s29 = sadd.s32 1, %s1003_s25 }
   0x8   : > { %s161_s30 = ssub.s32 %s1007_s26, %s1081_s28  ;;  %p174_p0 = scmp.ne.s32.totalorder %s1003_s25, %s999_s24 }
   0x9   : > { %p162_p1 = scmp.eq.s32.totalorder %s161_s30, 0  ;;  %p175_p2 = scmp.eq.s32.totalorder %s1077_s5, 1 }
   0xa   : > { %p180_p3 = scmp.ne.s32.totalorder %s999_s24, %s995_s23  ;;  %p181_p4 = scmp.eq.s32.totalorder %s860_s27, 1 }
   0xb   : > { %s1092_s7 = scalar_select %p162_p1, %s1003_s25, %s164_s29  }
   0xc   : > { %p1094_p5 = por %p175_p2, %p174_p0  ;;  %p1098_p6 = por %p181_p4, %p180_p3 }
   0xd   : > { %p863_p7 = scmp.ge.s32.totalorder %s1007_s26, 1  ;;  %p229_p8 = scmp.lt.s32.totalorder %s1007_s26, 3 }
   0xf   : > { %p230_p9 = pnand %p863_p7, %p229_p8 }
  0x10   : > { %s864_s16 = sshll.u32 (!%p230_p9), %s1077_s5, 2  ;;  %s1014_s20 = smov (!%p230_p9), 96  }
  0x11   : > { %233 = sbr.rel (%p230_p9) target bundleno = 560 (0x230), region = 44  ;;  %p264_p10 = scmp.lt.s32.totalorder (!%p230_p9), %s864_s16, 7 }
  0x12   : > { %s1015_s21 = smov (!%p230_p9), 64   ;;  %s1016_s22 = smov (!%p230_p9), 32  }
  0x13   : > { %s261_s30 = sand.u32 (!%p230_p9), 1, %s999_s24   ;;  %s881_s10 = sshll.u32 (!%p230_p9), %s1077_s5, 4 }
  0x14   : > { %s1220_s15 = scalar_lea.hbm (!%p230_p9), %s1263_s6, %s881_s10  ;;  %s781_s17 = scalar_lea.sflag (!%p230_p9), [#allocation4], %s261_s30 }
  0x15   : > { %s1017_s5 = smov (!%p230_p9), [#allocation3]  }
  0x16   : > { %v288_v1 = vld [vmem:[%s1259_s2 + $0x28] sm:$0xff]  ;;  %v287_v2 = vld [vmem:[%s1259_s2 + $0x20] sm:$0xff]  ;;  %v1009_v5 = vmov 0.0   ;;  %v1010_v6 = vmov 1   ;;  %v290_v7 = vld [vmem:[%s1259_s2 + $0x38] sm:$0xff]  ;;  %s1271_s16 = smov (!%p264_p10, %s864_s16), 7  ;;  %v293_v30 = vlaneseq }
  0x17   : > { %v284_v3 = vld [vmem:[%s1259_s2 + $0x8] sm:$0xff]  ;;  %354 = vmatprep.subr.mxu0 %v288_v1  ;;  %v283_v4 = vld [vmem:[%s1259_s2] sm:$0xff]  ;;  %390 = vmatprep.mubr.f32.mxu0 %v1009_v5  ;;  %v289_v8 = vld [vmem:[%s1259_s2 + $0x30] sm:$0xff]  ;;  %s865_s11 = sshll.u32 %s1271_s16, 3  ;;  %vm313_vm0 = vcmask 130048   ;;  %v1011_v19 = vmov 2  }
  0x18   : > { %355 = vmatpush1.msra.mxu0 %v287_v2  ;;  %932 = vset.pattern.permute.xlu1 %v1010_v6  ;;  %v286_v9 = vld [vmem:[%s1259_s2 + $0x18] sm:$0xff]  ;;  %v285_v10 = vld [vmem:[%s1259_s2 + $0x10] sm:$0xff]  ;;  %s273_s14 = scalar_lea.vmem %s1258_s1, %s865_s11  ;;  %s267_s18 = scalar_lea.vmem %s1257_s0, %s865_s11  ;;  %v1012_v20 = vmov 3   ;;  %v1013_v21 = vmov 0   ;;  %v1146_v31 = vshrl.u32 %v293_v30, 7  ;;  %vm692_vm2 = vcmask 261120  }
  0x19   : > { %356 = vmatprep.subr.mxu0 %v284_v3  ;;  %931 = vset.pattern.permute.xlu0 %v1010_v6  ;;  %v275_v11 = vld [vmem:[%s273_s14] sm:$0xff]  ;;  %v281_v12 = vld [vmem:[%s267_s18 + $0x10] sm:$0xff]  ;;  %v276_v13 = vld [vmem:[%s273_s14 + $0x8] sm:$0xff]  ;;  %vm761_vm6 = vcmask 130112   ;;  %vm768_vm7 = vcmask 195712   ;;  %s262_s11 = scalar_lea.vmem [#allocation3], %s261_s30 }
  0x1a   : > { %357 = vmatpush1.msra.mxu0 %v283_v4  ;;  %443 = vmatprep.subr.mxu1 %v290_v7  ;;  %v279_v14 = vld [vmem:[%s267_s18] sm:$0xff]  ;;  %v282_v15 = vld [vmem:[%s267_s18 + $0x18] sm:$0xff]  ;;  %v280_v16 = vld [vmem:[%s267_s18 + $0x8] sm:$0xff]  ;;  %v295_v34 = vsub.s32 0, %v1146_v31  ;;  %v299_v38 = vsub.s32 1, %v1146_v31  ;;  %s793_s12 = sshll.u32 %s262_s11, 4  ;;  %s794_s12 = int_to_ptr.vmem [resolvable:$true] %s793_s12 }
  0x1b   : > { %444 = vmatpush1.msra.mxu1 %v289_v8  ;;  %479 = vmatprep.mubr.f32.mxu1 %v1009_v5  ;;  %v277_v17 = vld [vmem:[%s273_s14 + $0x10] sm:$0xff]  ;;  %v278_v18 = vld [vmem:[%s273_s14 + $0x18] sm:$0xff]  ;;  %v1152_v35 = vld [vmem:[%s1260_s3] sm:$0xf]  ;;  %vm775_vm8 = vcmask 261312   ;;  %vm778_vm9 = vcmask 253952  }
  0x1c   : > { %445 = vmatprep.subr.mxu1 %v286_v9  ;;  %868 = vmatmul.mubr.msk.f32.vlgmr.msra.gmra.mxu0 %vm313_vm0, %v275_v11  ;;  %v296_v37 = vrot.slane %v1152_v35, %v295_v34  ;;  %v1159_v42 = vrot.slane %v1152_v35, %v299_v38  ;;  %s947_s18 = scalar_lea.vmem %s794_s12, 16  ;;  %s951_s16 = sshll.u32 %s1017_s5, 4  ;;  %s952_s16 = int_to_ptr.vmem [resolvable:$false] %s951_s16 }
  0x1d   : > { %446 = vmatpush1.msra.mxu1 %v285_v10  ;;  %396 = vmatprep.mubr.f32.mxu0 %v1009_v5  ;;  %p948_p11 = scmp.ne.s32.totalorder %s794_s12, %s947_s18  ;;  %s953_s19 = scalar_lea.vmem %s952_s16, 32 }
  0x1e   : > { %872 = vmatmul.mubr.msk.f32.vlgmr.msra.gmra.mxu1 %vm313_vm0, %v275_v11  ;;  %553 = vperm.xlu1 %932, %v281_v12   ;;  %p954_p0 = scmp.lt.s32.totalorder %s794_s12, %s952_s16  ;;  %p955_p1 = scmp.lt.s32.totalorder %s953_s19, %s947_s18 }
  0x1f   : > { %545 = vperm.xlu0 %931, %v279_v14   ;;  %485 = vmatprep.mubr.f32.mxu1 %v1009_v5  ;;  %p949_p12 = pnand %p948_p11, %p1094_p5 }
  0x20   : > { %869 = vmatmul.mubr.msk.f32.gmra.mxu0 %vm313_vm0, %v276_v13  ;;  %p956_p2 = por %p955_p1, %p954_p0 }
  0x21   : > { %402 = vmatprep.mubr.f32.mxu0 %v1009_v5  ;;  %p950_p13 = pneg %p949_p12 }
  0x22   : > { %873 = vmatmul.mubr.msk.f32.gmra.mxu1 %vm313_vm0, %v276_v13  ;;  %557 = vperm.xlu1 %932, %v282_v15  }
  0x23   : > { %549 = vperm.xlu0 %931, %v280_v16   ;;  %491 = vmatprep.mubr.f32.mxu1 %v1009_v5  ;;  %p957_p3 = pnand %p956_p2, %p950_p13 }
  0x24   : > { %870 = vmatmul.mubr.msk.f32.gmra.mxu0 %vm313_vm0, %v277_v17 }
  0x25   : > { %408 = vmatprep.mubr.f32.mxu0 %v1009_v5 }
  0x26   : > { %874 = vmatmul.mubr.msk.f32.gmra.mxu1 %vm313_vm0, %v277_v17  ;;  %934 = vset.pattern.permute.xlu1 %v1011_v19 }
  0x27   : > { %589 = vperm.xlu1 %934, %v280_v16   ;;  %933 = vset.pattern.permute.xlu0 %v1011_v19 }
  0x28   : > { %585 = vperm.xlu0 %933, %v279_v14   ;;  %497 = vmatprep.mubr.f32.mxu1 %v1009_v5 }
  0x29   : > { %871 = vmatmul.mubr.msk.f32.gmra.mxu0 %vm313_vm0, %v278_v18 }
  0x2a   : > { %875 = vmatmul.mubr.msk.f32.gmra.mxu1 %vm313_vm0, %v278_v18 }
  0x2b   : > { %593 = vperm.xlu1 %934, %v281_v12  }
  0x2c   : > { %597 = vperm.xlu0 %933, %v282_v15  }
  0x2f   : > { %935 = vset.pattern.permute.xlu1 %v1012_v20 }
  0x30   : > { %625 = vperm.xlu1 %935, %v279_v14   ;;  %936 = vset.pattern.permute.xlu0 %v1012_v20 }
  0x31   : > { %629 = vperm.xlu0 %936, %v280_v16  }
  0x34   : > { %633 = vperm.xlu1 %935, %v281_v12  }
  0x35   : > { %937 = vset.pattern.permute.xlu0 %v1013_v21 }
  0x36   : > { %518 = vperm.xlu0 %937, %v279_v14  }
  0x38   : > { %637 = vperm.xlu1 %935, %v282_v15  }
  0x3a   : > { %533 = vperm.xlu0 %937, %v282_v15  }
  0x3c   : > { %938 = vset.pattern.permute.xlu1 %v1013_v21  ;;  %v307_v21 = vsub.s32 3, %v1146_v31 }
  0x3d   : > { %523 = vperm.xlu1 %938, %v280_v16  }
  0x41   : > { %528 = vperm.xlu1 %938, %v281_v12  }
  0x99   : > { %v554_v22 = vpop.permute.xlu1 %553 }
  0x9a   : > { %v546_v24 = vpop.permute.xlu0 %545 }
  0x9d   : > { %v1143_v23 = vpop.permute.xlu1 %557 }
  0x9e   : > { %v550_v26 = vpop.permute.xlu0 %549 }
  0xa2   : > { %v590_v25 = vpop.permute.xlu1 %589 }
  0xa3   : > { %v586_v28 = vpop.permute.xlu0 %585 }
  0xa6   : > { %v594_v27 = vpop.permute.xlu1 %593 }
  0xa7   : > { %v598_v32 = vpop.permute.xlu0 %597 }
  0xab   : > { %v626_v29 = vpop.permute.xlu1 %625 }
  0xac   : > { %v630_v36 = vpop.permute.xlu0 %629 }
  0xaf   : > { %v634_v33 = vpop.permute.xlu1 %633 }
  0xb1   : > { %v519_v44 = vpop.permute.xlu0 %518 }
  0xb3   : > { %v638_v39 = vpop.permute.xlu1 %637 }
  0xb8   : > { %v524_v46 = vpop.permute.xlu1 %523 }
  0xbc   : > { %v529_v61 = vpop.permute.xlu1 %528 }
  0xdc   : > { %v392_v40 = vpop.f32.mrf.mxu0 }
  0xdd   : > { %v393_v41 = vadd.f32 %v392_v40, %v296_v37 }
  0xde   : > { %v394_v43 = vpop.f32.mrf.mxu0  ;;  %v1166_v63 = vpop.f32.mrf.mxu1 }
  0xdf   : > { %v504_v45 = vand.u32 2147483647, %v393_v41  ;;  %v395_v48 = vadd.f32 %v394_v43, %v1159_v42 }
  0xe0   : > { %v398_v47 = vpop.f32.mrf.mxu0  ;;  %v483_v8 = vpop.f32.mrf.mxu1 }
  0xe1   : > { %v399_v49 = vadd.f32 %v398_v47, %v296_v37  ;;  %v536_v50 = vmul.f32 %v519_v44, %v504_v45  ;;  %v560_v51 = vmul.f32 %v546_v24, %v504_v45  ;;  %v600_v56 = vmul.f32 %v586_v28, %v504_v45  ;;  %v880_v28 = vld [vmem:[%s1261_s4] ss:$0 sm:$0xff]  ;;  %v534_v47 = vpop.permute.xlu0 %533 }
  0xe2   : > { %v400_v52 = vpop.f32.mrf.mxu0  ;;  %v640_v7 = vmul.f32 %v626_v29, %v504_v45  ;;  %v1172_v13 = vpop.f32.mrf.mxu1 }
  0xe3   : > { %v505_v53 = vand.u32 2147483647, %v399_v49  ;;  %568 = vrot.lane.b32.xlu1 %v560_v51, %s1014_s20  ;;  %v1163_v54 = vadd.f32 %v536_v50, %v395_v48  ;;  %v401_v57 = vadd.f32 %v400_v52, %v1159_v42 }
  0xe4   : > { %v404_v55 = vpop.f32.mrf.mxu0  ;;  %v489_v16 = vpop.f32.mrf.mxu1 }
  0xe5   : > { %v405_v58 = vadd.f32 %v404_v55, %v296_v37  ;;  %v537_v59 = vmul.f32 %v524_v46, %v505_v53  ;;  %v561_v60 = vmul.f32 %v550_v26, %v505_v53  ;;  %v601_v6 = vmul.f32 %v590_v25, %v505_v53 }
  0xe6   : > { %v406_v62 = vpop.f32.mrf.mxu0  ;;  %v641_v12 = vmul.f32 %v630_v36, %v505_v53  ;;  %v1177_v19 = vpop.f32.mrf.mxu1  ;;  %v308_v25 = vrot.slane %v1152_v35, %v307_v21 }
  0xe7   : > { %v506_v0 = vand.u32 2147483647, %v405_v58  ;;  %v407_v1 = vadd.f32 %v406_v62, %v1159_v42  ;;  %570 = vrot.lane.b32.xlu0 %v561_v60, %s1014_s20  ;;  %608 = vrot.lane.b32.xlu1 %v600_v56, %s1015_s21  ;;  %v541_v2 = vadd.f32 %v537_v59, %v401_v57 }
  0xe9   : > { %v410_v3 = vpop.f32.mrf.mxu0  ;;  %v538_v5 = vmul.f32 %v529_v61, %v506_v0  ;;  %v562_v11 = vmul.f32 %v554_v22, %v506_v0  ;;  %v602_v14 = vmul.f32 %v594_v27, %v506_v0  ;;  %v642_v17 = vmul.f32 %v634_v33, %v506_v0  ;;  %v495_v22 = vpop.f32.mrf.mxu1 }
  0xea   : > { %v411_v4 = vadd.f32 %v410_v3, %v296_v37  ;;  %v490_v33 = vadd.f32 %v489_v16, %v308_v25  ;;  %v496_v38 = vadd.f32 %v495_v22, %v308_v25 }
  0xeb   : > { %610 = vrot.lane.b32.xlu0 %v601_v6, %s1015_s21  ;;  %648 = vrot.lane.b32.xlu1 %v640_v7, %s1016_s22  ;;  %v1170_v9 = vadd.f32 %v538_v5, %v407_v1  ;;  %v1180_v24 = vpop.f32.mrf.mxu1  ;;  %v412_v58 = vpop.f32.mrf.mxu0  ;;  %v303_v6 = vsub.s32 2, %v1146_v31 }
  0xec   : > { %v507_v10 = vand.u32 2147483647, %v411_v4  ;;  %v513_v37 = vmax.f32 %v490_v33, 0.0  ;;  %v514_v40 = vmax.f32 %v496_v38, 0.0  ;;  %v413_v3 = vadd.f32 %v412_v58, %v1159_v42 }
  0xee   : > { %v563_v15 = vmul.f32 %v1143_v23, %v507_v10  ;;  %v603_v18 = vmul.f32 %v598_v32, %v507_v10  ;;  %v643_v20 = vmul.f32 %v638_v39, %v507_v10  ;;  %v501_v23 = vpop.f32.mrf.mxu1  ;;  %v484_v32 = vadd.f32 %v483_v8, %v308_v25 }
  0xef   : > { %572 = vrot.lane.b32.xlu1 %v562_v11, %s1014_s20  ;;  %650 = vrot.lane.b32.xlu0 %v641_v12, %s1016_s22  ;;  %v502_v26 = vadd.f32 %v501_v23, %v308_v25  ;;  %v713_v41 = vmul.f32 %v880_v28, %v513_v37  ;;  %v714_v45 = vmul.f32 %v880_v28, %v514_v40 }
  0xf0   : > { %v512_v36 = vmax.f32 %v484_v32, 0.0  ;;  %v539_v4 = vmul.f32 %v534_v47, %v507_v10 }
  0xf1   : > { %v515_v27 = vmax.f32 %v502_v26, 0.0  ;;  %v719_v44 = vsel %vm313_vm0, %v713_v41, 0.0  ;;  %v722_v46 = vsel %vm313_vm0, %v714_v45, 0.0 }
  0xf2   : > { %v712_v39 = vmul.f32 %v880_v28, %v512_v36  ;;  %v543_v12 = vadd.f32 %v539_v4, %v413_v3 }
  0xf3   : > { %612 = vrot.lane.b32.xlu1 %v602_v14, %s1015_s21  ;;  %574 = vrot.lane.b32.xlu0 %v563_v15, %s1014_s20  ;;  %v1186_v29 = vmul.f32 %v880_v28, %v515_v27  ;;  %v304_v14 = vrot.slane %v1152_v35, %v303_v6 }
  0xf4   : > { %v716_v43 = vsel %vm313_vm0, %v712_v39, 0.0 }
  0xf5   : > { %v488_v27 = vadd.f32 %v1172_v13, %v304_v14  ;;  %v494_v40 = vadd.f32 %v1177_v19, %v304_v14  ;;  %v725_v13 = vsel %vm313_vm0, %v1186_v29, 0.0 }
  0xf7   : > { %652 = vrot.lane.b32.xlu1 %v642_v17, %s1016_s22  ;;  %614 = vrot.lane.b32.xlu0 %v603_v18, %s1015_s21  ;;  %v509_v36 = vand.u32 2147483647, %v488_v27  ;;  %v510_v45 = vand.u32 2147483647, %v494_v40 }
  0xfb   : > { %654 = vrot.lane.b32.xlu0 %v643_v20, %s1016_s22  ;;  %v482_v20 = vadd.f32 %v1166_v63, %v304_v14 }
  0xfd   : > { %v508_v26 = vand.u32 2147483647, %v482_v20 }
 0x11a   : > { %717 = vadd.xlane.f32.xlu0 %v716_v43 }
 0x11b   : > { %720 = vadd.xlane.f32.xlu1 %v719_v44 }
 0x11f   : > { %723 = vadd.xlane.f32.xlu1 %v722_v46  ;;  %v500_v46 = vadd.f32 %v1180_v24, %v304_v14 }
 0x155   : > { %v569_v48 = vpop.permute.xlu1 %568 }
 0x156   : > { %v580_v51 = vadd.f32 %v569_v48, %v1163_v54 }
 0x159   : > { %v609_v49 = vpop.permute.xlu1 %608  ;;  %v571_v50 = vpop.permute.xlu0 %570 }
 0x15a   : > { %v620_v52 = vadd.f32 %v609_v49, %v580_v51  ;;  %v581_v56 = vadd.f32 %v571_v50, %v541_v2  ;;  %v511_v50 = vand.u32 2147483647, %v500_v46 }
 0x15d   : > { %v649_v53 = vpop.permute.xlu1 %648  ;;  %v611_v55 = vpop.permute.xlu0 %610 }
 0x15e   : > { %v660_v57 = vadd.f32 %v649_v53, %v620_v52  ;;  %v621_v60 = vadd.f32 %v611_v55, %v581_v56  ;;  %v732_v56 = vld [vmem:[#allocation2] sm:$0x1] }
 0x160   : > { %v668_v59 = vmin.f32 %v660_v57, 0.0  ;;  %vm664_vm1 = vcmp.gt.f32.partialorder %v660_v57, 0.0 }
 0x161   : > { %v573_v61 = vpop.permute.xlu1 %572  ;;  %v651_v62 = vpop.permute.xlu0 %650 }
 0x162   : > { %v672_v0 = vmul.f32 1.442695, %v668_v59  ;;  %v661_v1 = vadd.f32 %v651_v62, %v621_v60  ;;  %v582_v8 = vadd.f32 %v573_v61, %v1170_v9  ;;  %v751_v61 = vand.u32 127, %v293_v30 }
 0x164   : > { %939 = vpow2.f32 %v672_v0  ;;  %v669_v5 = vmin.f32 %v661_v1, 0.0  ;;  %vm665_vm3 = vcmp.gt.f32.partialorder %v661_v1, 0.0  ;;  %v763_v3 = vadd.s32 4294967280, %v751_v61 }
 0x165   : > { %v613_v54 = vpop.permute.xlu1 %612  ;;  %v575_v7 = vpop.permute.xlu0 %574 }
 0x166   : > { %v674_v2 = vmul.f32 1.442695, %v669_v5  ;;  %v622_v11 = vadd.f32 %v613_v54, %v582_v8  ;;  %v583_v17 = vadd.f32 %v575_v7, %v543_v12  ;;  %v770_v5 = vadd.s32 4294967272, %v751_v61 }
 0x167   : > { %v754_v54 = vsub.s32 %v751_v61, %v1146_v31  ;;  %v766_v8 = vsub.s32 %v763_v3, %v1146_v31 }
 0x168   : > { %941 = vpow2.f32 %v674_v2 }
 0x169   : > { %v653_v15 = vpop.permute.xlu1 %652  ;;  %v615_v16 = vpop.permute.xlu0 %614 }
 0x16a   : > { %v662_v18 = vadd.f32 %v653_v15, %v622_v11  ;;  %v623_v10 = vadd.f32 %v615_v16, %v583_v17  ;;  %v773_v15 = vsub.s32 %v770_v5, %v1146_v31 }
 0x16c   : > { %v670_v42 = vmin.f32 %v662_v18, 0.0  ;;  %vm666_vm4 = vcmp.gt.f32.partialorder %v662_v18, 0.0 }
 0x16d   : > { %v655_v21 = vpop.permute.xlu0 %654 }
 0x16e   : > { %v676_v22 = vmul.f32 1.442695, %v670_v42  ;;  %v663_v25 = vadd.f32 %v655_v21, %v623_v10 }
 0x170   : > { %943 = vpow2.f32 %v676_v22  ;;  %v671_v23 = vmin.f32 %v663_v25, 0.0  ;;  %vm667_vm5 = vcmp.gt.f32.partialorder %v663_v25, 0.0 }
 0x171   : > { %v940_v9 = vpop.eup %939 }
 0x172   : > { %v678_v28 = vmul.f32 1.442695, %v671_v23  ;;  %v876_v32 = vadd.f32 -1.0, %v940_v9 }
 0x174   : > { %945 = vpow2.f32 %v678_v28  ;;  %v684_v35 = vsel %vm664_vm1, %v660_v57, %v876_v32 }
 0x175   : > { %v942_v33 = vpop.eup %941  ;;  %v688_v37 = vmul.f32 %v684_v35, %v508_v26 }
 0x176   : > { %v877_v38 = vadd.f32 -1.0, %v942_v33 }
 0x177   : > { %v693_v63 = vsel %vm692_vm2, %v688_v37, 0.0 }
 0x178   : > { %694 = vadd.xlane.f32.xlu1 %v693_v63  ;;  %v685_v39 = vsel %vm665_vm3, %v661_v1, %v877_v38  ;;  %v756_v1 = vadd.s32 4294967288, %v751_v61 }
 0x179   : > { %v689_v41 = vmul.f32 %v685_v39, %v509_v36 }
 0x17a   : > { %v759_v7 = vsub.s32 %v756_v1, %v1146_v31 }
 0x17b   : > { %v696_v43 = vsel %vm692_vm2, %v689_v41, 0.0 }
 0x17c   : > { %697 = vadd.xlane.f32.xlu0 %v696_v43  ;;  %726 = vadd.xlane.f32.xlu1 %v725_v13 }
 0x17d   : > { %v944_v44 = vpop.eup %943 }
 0x17e   : > { %v878_v47 = vadd.f32 -1.0, %v944_v44 }
 0x180   : > { %v686_v48 = vsel %vm666_vm4, %v662_v18, %v878_v47 }
 0x181   : > { %v946_v49 = vpop.eup %945  ;;  %v690_v51 = vmul.f32 %v686_v48, %v510_v45 }
 0x182   : > { %v879_v52 = vadd.f32 -1.0, %v946_v49 }
 0x183   : > { %v699_v19 = vsel %vm692_vm2, %v690_v51, 0.0 }
 0x184   : > { %700 = vadd.xlane.f32.xlu0 %v699_v19  ;;  %v687_v29 = vsel %vm667_vm5, %v663_v25, %v879_v52 }
 0x185   : > { %v691_v53 = vmul.f32 %v687_v29, %v511_v50 }
 0x187   : > { %v702_v55 = vsel %vm692_vm2, %v691_v53, 0.0 }
 0x188   : > { %703 = vadd.xlane.f32.xlu0 %v702_v55 }
 0x19e   : > { %735 = vperm.xlu0 %937, %v732_v56  }
 0x1a3   : > { %v718_v24 = vpop.xlane.xlu0 %717 }
 0x1a4   : > { %v721_v57 = vpop.xlane.xlu1 %720 }
 0x1a8   : > { %v724_v59 = vpop.xlane.xlu1 %723 }
 0x201   : > { %v695_v62 = vpop.xlane.xlu1 %694 }
 0x202   : > { %v728_v6 = vadd.f32 %v718_v24, %v695_v62 }
 0x205   : > { %v698_v58 = vpop.xlane.xlu0 %697  ;;  %v727_v4 = vpop.xlane.xlu1 %726 }
 0x206   : > { %v729_v11 = vadd.f32 %v721_v57, %v698_v58 }
 0x20d   : > { %v701_v60 = vpop.xlane.xlu0 %700 }
 0x20e   : > { %v730_v12 = vadd.f32 %v724_v59, %v701_v60 }
 0x211   : > { %v704_v0 = vpop.xlane.xlu0 %703 }
 0x212   : > { %v731_v30 = vadd.f32 %v727_v4, %v704_v0 }
 0x219   : > { %v736_v2 = vpop.permute.xlu0 %735 }
 0x21a   : > { %v741_v14 = vrot.slane %v736_v2, %v295_v34 }
 0x21c   : > { %v742_v16 = vadd.f32 %v741_v14, %v728_v6  ;;  %v743_v17 = vadd.f32 %v741_v14, %v729_v11  ;;  %v744_v18 = vadd.f32 %v741_v14, %v730_v12  ;;  %v745_v42 = vadd.f32 %v741_v14, %v731_v30 }
 0x21e   : > { %v755_v10 = vrot.slane %v742_v16, %v754_v54  ;;  %v760_v20 = vrot.slane %v743_v17, %v759_v7  ;;  %v767_v21 = vrot.slane %v744_v18, %v766_v8  ;;  %v774_v34 = vrot.slane %v745_v42, %v773_v15 }
 0x220   : > { %v762_v22 = vsel %vm761_vm6, %v760_v20, %v755_v10 }
 0x221   : > { %v769_v31 = vsel %vm768_vm7, %v767_v21, %v762_v22 }
 0x222   : > { %v776_v25 = vsel %vm775_vm8, %v774_v34, %v769_v31 }
 0x223   : > { %779 = vst.msk [vmem:[%s262_s11] sm:$0x1] %vm778_vm9, %v776_v25 }
 0x224   : > { %960 = shalt.err (!%p957_p3)
}
 0x225   : > { %s961_s20 = scalar_lea.hbm %s1220_s15, 16  ;;  %s965_s27 = scalar_lea.hbm %s1263_s6, 32 }
 0x226   : > { %p962_p4 = scmp.ne.s32.totalorder %s1220_s15, %s961_s20  ;;  %p966_p9 = scmp.lt.s32.totalorder %s1220_s15, %s1263_s6 }
 0x227   : > { %p967_p10 = scmp.lt.s32.totalorder %s965_s27, %s961_s20 }
 0x228   : > { %p963_p7 = pnand %p962_p4, %p1094_p5 }
 0x229   : > { %p968_p11 = por %p967_p10, %p966_p9 }
 0x22a   : > { %p964_p8 = pneg %p963_p7 }
 0x22c   : > { %p969_p12 = pnand %p968_p11, %p964_p8 }
 0x22e   : > { %972 = shalt.err (!%p969_p12)
}
 0x22f   : > { %884 = dma.vmem_to_hbm [thread:$0]  (%p1094_p5), %s794_s12, 16, %s1220_s15, %s781_s17  }
 0x230 PF: > { %p890_p13 = scmp.ge.s32.totalorder %s1007_s26, 2  ;;  %s805_s10 = sand.u32 1, %s995_s23  }
 0x231   : > { %s806_s11 = scalar_lea.sflag [#allocation4], %s805_s10 }
 0x232   : > { %p887_p0 = pnand %p890_p13, %p1098_p6 }
 0x234   : > { %p888_p1 = pneg %p887_p0 }
 0x236   : > { %990 = dma.done.wait (%p888_p1), %s806_s11, 16  }
 0x237   : > { %992 = vsyncadd (%p888_p1), %s806_s11, 4294967280  ;;  %p18_p2 = scmp.ge.s32.totalorder %s1081_s28, 4   ;;  %s1266_s23 = smov %s999_s24 }
 0x238   : > { %s1267_s24 = smov %s1003_s25  ;;  %s1268_s25 = smov %s1092_s7 }
 0x239   : > { %s1269_s26 = smov %s1081_s28  ;;  %20 = sbr.rel (!%p18_p2) target bundleno = 6 (0x6), region = 82 }
 0x23e   :  { %810 = vsyncpa [#allocation4], 1 }
 0x23f   :  { %812 = vsyncpa [#allocation4 + $0x1], 1 }

</bundles_post_ra>
